<compile_context>
chip_gen: v7x
topology: tpu7x:2x2x1
jax: 0.10.0
libtpu: 0.0.40
codegen_flags: <defaults>
</compile_context>

<pallas_src>
import jax
import jax.numpy as jnp
from jax.experimental import pallas as pl
from jax.experimental.pallas import tpu as pltpu  # noqa: F401  (TPU backend)

WINDOW_SIZE = 2
STEP_SIZE = 1


def _window_starts(in_features, window_size, step_size):
    new_in_features = in_features - window_size + 1
    return [
        i
        for i in range(0, new_in_features, step_size)
        if i + window_size <= in_features
    ]


def _make_crop_kernel(num_channels, num_nodes, in_features, starts, window_size):
    """Kernel over flattened 2-D views.

    x_ref : (B, C*N*F)                       whole array resident in VMEM
    o_ref : (B, C*num_windows*N*window)      whole array resident in VMEM
    """

    def kernel(x_ref, o_ref):
        # One contiguous load of the whole input slab.
        x = x_ref[...]

        # Static lane slices only: the compiler lowers these to lane
        # selects/rotates feeding a single register-resident output tile.
        # Piece order (c, w, n) == row-major order of the flattened output,
        # which is exactly torch.cat(windows, dim=2).
        pieces = []
        for ci in range(num_channels):
            for start in starts:
                for ni in range(num_nodes):
                    base = ci * num_nodes * in_features + ni * in_features + start
                    pieces.append(x[:, base:base + window_size])

        # Single full-tile store (lane-dense, unmasked for the whole block).
        o_ref[...] = jnp.concatenate(pieces, axis=-1)

    return kernel


def cropping(x, window_size=WINDOW_SIZE, step_size=STEP_SIZE):
    """Pallas equivalent of Cropping.forward(x)."""
    b, c, n, f = x.shape
    starts = _window_starts(f, window_size, step_size)
    num_windows = len(starts)
    assert num_windows > 0, "window_size larger than in_features"

    # Pre-flatten to a lane-major 2-D slab (pure layout plumbing, free).
    x2d = x.reshape(b, c * n * f)

    kernel = _make_crop_kernel(c, n, f, starts, window_size)
    out2d = pl.pallas_call(
        kernel,
        out_shape=jax.ShapeDtypeStruct(
            (b, c * num_windows * n * window_size), x.dtype
        ),
        # No grid / default full-array BlockSpecs: the whole op is a few KB,
        # so the entire input and output live in VMEM for one invocation.
    )(x2d)

    # Restore the PyTorch-visible output shape (reshape only — no transpose).
    return out2d.reshape(b, c, num_windows * n, window_size)


def _reference(x, window_size=WINDOW_SIZE, step_size=STEP_SIZE):
    f = x.shape[-1]
    starts = _window_starts(f, window_size, step_size)
    windows = [x[..., i:i + window_size] for i in starts]
    return jnp.concatenate(windows, axis=2)


if __name__ == "__main__":
    # Shapes from the reference script: torch.randn(32, 1, 5, 4)
    batch_size, conv_in_channels, num_nodes, in_features = 32, 1, 5, 4
    key = jax.random.PRNGKey(0)
    x = jax.random.normal(
        key, (batch_size, conv_in_channels, num_nodes, in_features),
        dtype=jnp.float32,
    )

    out = cropping(x)
    out = jax.block_until_ready(out)

    ref = _reference(x)
    n_windows = len(_window_starts(in_features, WINDOW_SIZE, STEP_SIZE))
    assert out.shape == (
        batch_size,
        conv_in_channels,
        n_windows * num_nodes,
        WINDOW_SIZE,
    ), out.shape
    assert out.dtype == x.dtype
    assert jnp.array_equal(out, ref), "Pallas output mismatch vs JAX reference"

    print("KERNEL_OK")
</pallas_src>

<mosaic_0001>
module attributes {stable_mosaic.version = 11 : i64} {
  func.func @kernel(%arg0: memref<32x20xf32, #tpu.memory_space<vmem>>, %arg1: memref<32x30xf32, #tpu.memory_space<vmem>>) attributes {dimension_semantics = [], scalar_prefetch = 0 : i64, scratch_operands = 0 : i64, tpu.core_type = #tpu.core_type<tc>} {
    %c0 = arith.constant 0 : index
    %c0_0 = arith.constant 0 : index
    %0 = vector.load %arg0[%c0, %c0_0] : memref<32x20xf32, #tpu.memory_space<vmem>>, vector<32x20xf32>
    %1 = vector.extract_strided_slice %0 {offsets = [0, 0], sizes = [32, 2], strides = [1, 1]} : vector<32x20xf32> to vector<32x2xf32>
    %2 = vector.extract_strided_slice %0 {offsets = [0, 4], sizes = [32, 2], strides = [1, 1]} : vector<32x20xf32> to vector<32x2xf32>
    %3 = vector.extract_strided_slice %0 {offsets = [0, 8], sizes = [32, 2], strides = [1, 1]} : vector<32x20xf32> to vector<32x2xf32>
    %4 = vector.extract_strided_slice %0 {offsets = [0, 12], sizes = [32, 2], strides = [1, 1]} : vector<32x20xf32> to vector<32x2xf32>
    %5 = vector.extract_strided_slice %0 {offsets = [0, 16], sizes = [32, 2], strides = [1, 1]} : vector<32x20xf32> to vector<32x2xf32>
    %6 = vector.extract_strided_slice %0 {offsets = [0, 1], sizes = [32, 2], strides = [1, 1]} : vector<32x20xf32> to vector<32x2xf32>
    %7 = vector.extract_strided_slice %0 {offsets = [0, 5], sizes = [32, 2], strides = [1, 1]} : vector<32x20xf32> to vector<32x2xf32>
    %8 = vector.extract_strided_slice %0 {offsets = [0, 9], sizes = [32, 2], strides = [1, 1]} : vector<32x20xf32> to vector<32x2xf32>
    %9 = vector.extract_strided_slice %0 {offsets = [0, 13], sizes = [32, 2], strides = [1, 1]} : vector<32x20xf32> to vector<32x2xf32>
    %10 = vector.extract_strided_slice %0 {offsets = [0, 17], sizes = [32, 2], strides = [1, 1]} : vector<32x20xf32> to vector<32x2xf32>
    %11 = vector.extract_strided_slice %0 {offsets = [0, 2], sizes = [32, 2], strides = [1, 1]} : vector<32x20xf32> to vector<32x2xf32>
    %12 = vector.extract_strided_slice %0 {offsets = [0, 6], sizes = [32, 2], strides = [1, 1]} : vector<32x20xf32> to vector<32x2xf32>
    %13 = vector.extract_strided_slice %0 {offsets = [0, 10], sizes = [32, 2], strides = [1, 1]} : vector<32x20xf32> to vector<32x2xf32>
    %14 = vector.extract_strided_slice %0 {offsets = [0, 14], sizes = [32, 2], strides = [1, 1]} : vector<32x20xf32> to vector<32x2xf32>
    %15 = vector.extract_strided_slice %0 {offsets = [0, 18], sizes = [32, 2], strides = [1, 1]} : vector<32x20xf32> to vector<32x2xf32>
    %16 = tpu.concatenate %1, %2, %3, %4, %5, %6, %7, %8, %9, %10, %11, %12, %13, %14, %15 in 1 : vector<32x2xf32>, vector<32x2xf32>, vector<32x2xf32>, vector<32x2xf32>, vector<32x2xf32>, vector<32x2xf32>, vector<32x2xf32>, vector<32x2xf32>, vector<32x2xf32>, vector<32x2xf32>, vector<32x2xf32>, vector<32x2xf32>, vector<32x2xf32>, vector<32x2xf32>, vector<32x2xf32> -> vector<32x30xf32>
    %c0_1 = arith.constant 0 : index
    %c0_2 = arith.constant 0 : index
    %17 = vector.load %arg1[%c0_1, %c0_2] : memref<32x30xf32, #tpu.memory_space<vmem>>, vector<32x30xf32>
    tpu.vector_store %arg1[%c0_1, %c0_2], %16 {strides = array<i32>} : memref<32x30xf32, #tpu.memory_space<vmem>>, vector<32x30xf32>,
    return
  }
}

</mosaic_0001>

<bundles_post_ra>
// kernel: tpu_custom_call.1
= control target key start
LH: loop header
LB: loop body
LE: loop exit
PB: predicated region body
PF: predicated region fallthrough
CT: control target
= control target key end

     0   :  { %s317_s10 = smov 126   ;;  %s480_s0 = inlined_call_operand.vmem [shape: f32[32,20], index: 0, kind: input, shape index: {}]   ;;  %s481_s1 = inlined_call_operand.hbm [shape: f32[32,30], index: 1, kind: output, shape index: {}]  }
   0x1   :  { %v347_v0 = vld [vmem:[%s480_s0 + $0x10] sm:$0xff]  ;;  %v352_v1 = vld [vmem:[%s480_s0] sm:$0xff]  ;;  %v359_v2 = vld [vmem:[%s480_s0 + $0x18] sm:$0xff] }
   0x2   :  { %21 = vrot.lane.b32.xlu1 %v347_v0, %s317_s10  ;;  %17 = vrot.lane.b32.xlu0 %v352_v1, %s317_s10  ;;  %v364_v3 = vld [vmem:[%s480_s0 + $0x8] sm:$0xff] }
   0x3   :  { %6 = vsyncpa [#allocation3], 0  ;;  %s318_s15 = smov 124   ;;  %s319_s16 = smov 122   ;;  %vm185_vm0 = vcmask 15360   ;;  %vm190_vm1 = vcmask 31744  }
   0x4   :  { %s320_s0 = smov 120   ;;  %s321_s17 = smov 9   ;;  %vm195_vm2 = vcmask 48128   ;;  %vm200_vm3 = vcmask 64512   ;;  %vm205_vm4 = vcmask 80896   ;;  %vm210_vm5 = vcmask 97280  }
   0x5   :  { %s322_s18 = smov 7   ;;  %s323_s19 = smov 5   ;;  %vm215_vm6 = vcmask 113664   ;;  %vm220_vm7 = vcmask 130048   ;;  %vm225_vm8 = vcmask 146432   ;;  %vm230_vm9 = vcmask 162816  }
   0x6   :  { %23 = vrot.lane.b32.xlu1 %v359_v2, %s317_s10  ;;  %19 = vrot.lane.b32.xlu0 %v364_v3, %s317_s10  ;;  %s324_s20 = smov 3   ;;  %s325_s21 = smov 1   ;;  %vm235_vm10 = vcmask 179200   ;;  %vm240_vm11 = vcmask 195584   ;;  %vm245_vm12 = vcmask 211968   ;;  %vm250_vm13 = vcmask 228352  }
   0x7   :  { %s326_s22 = smov 18   ;;  %s327_s23 = smov 16   ;;  %vm255_vm14 = vcmask 244736  }
   0x8   :  { %s328_s24 = smov 14   ;;  %s329_s25 = smov 12  }
   0x9   :  { %s330_s26 = smov 10   ;;  %s331_s27 = smov [#allocation2]  }
   0xa   :  { %31 = vrot.lane.b32.xlu1 %v364_v3, %s318_s15  ;;  %29 = vrot.lane.b32.xlu0 %v352_v1, %s318_s15  ;;  %s265_s28 = sshll.u32 %s331_s27, 4  ;;  %s266_s28 = int_to_ptr.vmem [resolvable:$true] %s265_s28 }
   0xb   :  { %s293_s29 = scalar_lea.vmem %s266_s28, 512  ;;  %p298_p1 = scmp.lt.s32.totalorder %s266_s28, %s266_s28 }
   0xc   :  { %p294_p0 = scmp.ne.s32.totalorder %s266_s28, %s293_s29  ;;  %p299_p2 = scmp.lt.s32.totalorder %s293_s29, %s293_s29 }
   0xe   :  { %35 = vrot.lane.b32.xlu1 %v359_v2, %s318_s15  ;;  %33 = vrot.lane.b32.xlu0 %v347_v0, %s318_s15  ;;  %p300_p3 = por %p299_p2, %p298_p1 }
  0x10   :  { %p301_p4 = pnand %p300_p3, %p294_p0 }
  0x12   :  { %43 = vrot.lane.b32.xlu1 %v364_v3, %s319_s16  ;;  %41 = vrot.lane.b32.xlu0 %v352_v1, %s319_s16 }
  0x16   :  { %47 = vrot.lane.b32.xlu1 %v359_v2, %s319_s16  ;;  %45 = vrot.lane.b32.xlu0 %v347_v0, %s319_s16 }
  0x1a   :  { %55 = vrot.lane.b32.xlu1 %v364_v3, %s320_s0  ;;  %53 = vrot.lane.b32.xlu0 %v352_v1, %s320_s0 }
  0x1e   :  { %59 = vrot.lane.b32.xlu1 %v359_v2, %s320_s0  ;;  %57 = vrot.lane.b32.xlu0 %v347_v0, %s320_s0 }
  0x22   :  { %67 = vrot.lane.b32.xlu1 %v364_v3, %s321_s17  ;;  %65 = vrot.lane.b32.xlu0 %v352_v1, %s321_s17 }
  0x26   :  { %71 = vrot.lane.b32.xlu1 %v359_v2, %s321_s17  ;;  %69 = vrot.lane.b32.xlu0 %v347_v0, %s321_s17 }
  0x2a   :  { %79 = vrot.lane.b32.xlu1 %v364_v3, %s322_s18  ;;  %77 = vrot.lane.b32.xlu0 %v352_v1, %s322_s18 }
  0x2e   :  { %83 = vrot.lane.b32.xlu1 %v359_v2, %s322_s18  ;;  %81 = vrot.lane.b32.xlu0 %v347_v0, %s322_s18 }
  0x32   :  { %91 = vrot.lane.b32.xlu1 %v364_v3, %s323_s19  ;;  %89 = vrot.lane.b32.xlu0 %v352_v1, %s323_s19 }
  0x36   :  { %95 = vrot.lane.b32.xlu1 %v359_v2, %s323_s19  ;;  %93 = vrot.lane.b32.xlu0 %v347_v0, %s323_s19 }
  0x3a   :  { %103 = vrot.lane.b32.xlu1 %v364_v3, %s324_s20  ;;  %101 = vrot.lane.b32.xlu0 %v352_v1, %s324_s20 }
  0x3e   :  { %107 = vrot.lane.b32.xlu1 %v359_v2, %s324_s20  ;;  %105 = vrot.lane.b32.xlu0 %v347_v0, %s324_s20 }
  0x42   :  { %115 = vrot.lane.b32.xlu1 %v364_v3, %s325_s21  ;;  %113 = vrot.lane.b32.xlu0 %v352_v1, %s325_s21 }
  0x46   :  { %119 = vrot.lane.b32.xlu1 %v359_v2, %s325_s21  ;;  %117 = vrot.lane.b32.xlu0 %v347_v0, %s325_s21 }
  0x4a   :  { %127 = vrot.lane.b32.xlu1 %v364_v3, %s326_s22  ;;  %125 = vrot.lane.b32.xlu0 %v352_v1, %s326_s22 }
  0x4e   :  { %131 = vrot.lane.b32.xlu1 %v359_v2, %s326_s22  ;;  %129 = vrot.lane.b32.xlu0 %v347_v0, %s326_s22 }
  0x52   :  { %139 = vrot.lane.b32.xlu1 %v364_v3, %s327_s23  ;;  %137 = vrot.lane.b32.xlu0 %v352_v1, %s327_s23 }
  0x56   :  { %143 = vrot.lane.b32.xlu1 %v359_v2, %s327_s23  ;;  %141 = vrot.lane.b32.xlu0 %v347_v0, %s327_s23 }
  0x5a   :  { %151 = vrot.lane.b32.xlu1 %v364_v3, %s328_s24  ;;  %149 = vrot.lane.b32.xlu0 %v352_v1, %s328_s24 }
  0x5e   :  { %155 = vrot.lane.b32.xlu1 %v359_v2, %s328_s24  ;;  %153 = vrot.lane.b32.xlu0 %v347_v0, %s328_s24 }
  0x62   :  { %163 = vrot.lane.b32.xlu1 %v364_v3, %s329_s25  ;;  %161 = vrot.lane.b32.xlu0 %v352_v1, %s329_s25 }
  0x66   :  { %167 = vrot.lane.b32.xlu1 %v359_v2, %s329_s25  ;;  %165 = vrot.lane.b32.xlu0 %v347_v0, %s329_s25 }
  0x6a   :  { %175 = vrot.lane.b32.xlu1 %v364_v3, %s330_s26  ;;  %173 = vrot.lane.b32.xlu0 %v352_v1, %s330_s26 }
  0x6e   :  { %179 = vrot.lane.b32.xlu1 %v359_v2, %s330_s26  ;;  %177 = vrot.lane.b32.xlu0 %v347_v0, %s330_s26 }
  0x74   :  { %v22_v4 = vpop.permute.xlu1 %21  ;;  %v18_v5 = vpop.permute.xlu0 %17 }
  0x75   :  { %v186_v8 = vsel %vm185_vm0, %v352_v1, %v18_v5  ;;  %v188_v14 = vsel %vm185_vm0, %v347_v0, %v22_v4 }
  0x78   :  { %v24_v6 = vpop.permute.xlu1 %23  ;;  %v20_v7 = vpop.permute.xlu0 %19 }
  0x79   :  { %v187_v9 = vsel %vm185_vm0, %v364_v3, %v20_v7  ;;  %v189_v15 = vsel %vm185_vm0, %v359_v2, %v24_v6 }
  0x7c   :  { %v32_v10 = vpop.permute.xlu1 %31  ;;  %v30_v11 = vpop.permute.xlu0 %29 }
  0x7d   :  { %v192_v12 = vsel %vm190_vm1, %v187_v9, %v32_v10  ;;  %v191_v13 = vsel %vm190_vm1, %v186_v8, %v30_v11 }
  0x80   :  { %v36_v16 = vpop.permute.xlu1 %35  ;;  %v34_v17 = vpop.permute.xlu0 %33 }
  0x81   :  { %v194_v18 = vsel %vm190_vm1, %v189_v15, %v36_v16  ;;  %v193_v19 = vsel %vm190_vm1, %v188_v14, %v34_v17 }
  0x84   :  { %v44_v20 = vpop.permute.xlu1 %43  ;;  %v42_v21 = vpop.permute.xlu0 %41 }
  0x85   :  { %v197_v22 = vsel %vm195_vm2, %v192_v12, %v44_v20  ;;  %v196_v23 = vsel %vm195_vm2, %v191_v13, %v42_v21 }
  0x88   :  { %v48_v24 = vpop.permute.xlu1 %47  ;;  %v46_v25 = vpop.permute.xlu0 %45 }
  0x89   :  { %v199_v26 = vsel %vm195_vm2, %v194_v18, %v48_v24  ;;  %v198_v27 = vsel %vm195_vm2, %v193_v19, %v46_v25 }
  0x8c   :  { %v56_v28 = vpop.permute.xlu1 %55  ;;  %v54_v29 = vpop.permute.xlu0 %53 }
  0x8d   :  { %v202_v30 = vsel %vm200_vm3, %v197_v22, %v56_v28  ;;  %v201_v31 = vsel %vm200_vm3, %v196_v23, %v54_v29 }
  0x90   :  { %v60_v32 = vpop.permute.xlu1 %59  ;;  %v58_v33 = vpop.permute.xlu0 %57 }
  0x91   :  { %v204_v34 = vsel %vm200_vm3, %v199_v26, %v60_v32  ;;  %v203_v35 = vsel %vm200_vm3, %v198_v27, %v58_v33 }
  0x94   :  { %v68_v36 = vpop.permute.xlu1 %67  ;;  %v66_v37 = vpop.permute.xlu0 %65 }
  0x95   :  { %v207_v4 = vsel %vm205_vm4, %v202_v30, %v68_v36  ;;  %v206_v5 = vsel %vm205_vm4, %v201_v31, %v66_v37 }
  0x98   :  { %v72_v38 = vpop.permute.xlu1 %71  ;;  %v70_v39 = vpop.permute.xlu0 %69 }
  0x99   :  { %v209_v14 = vsel %vm205_vm4, %v204_v34, %v72_v38  ;;  %v208_v15 = vsel %vm205_vm4, %v203_v35, %v70_v39 }
  0x9c   :  { %v80_v40 = vpop.permute.xlu1 %79  ;;  %v78_v41 = vpop.permute.xlu0 %77 }
  0x9d   :  { %v212_v8 = vsel %vm210_vm5, %v207_v4, %v80_v40  ;;  %v211_v9 = vsel %vm210_vm5, %v206_v5, %v78_v41 }
  0xa0   :  { %v84_v42 = vpop.permute.xlu1 %83  ;;  %v82_v43 = vpop.permute.xlu0 %81 }
  0xa1   :  { %v214_v20 = vsel %vm210_vm5, %v209_v14, %v84_v42  ;;  %v213_v21 = vsel %vm210_vm5, %v208_v15, %v82_v43 }
  0xa4   :  { %v92_v44 = vpop.permute.xlu1 %91  ;;  %v90_v45 = vpop.permute.xlu0 %89 }
  0xa5   :  { %v217_v10 = vsel %vm215_vm6, %v212_v8, %v92_v44  ;;  %v216_v11 = vsel %vm215_vm6, %v211_v9, %v90_v45 }
  0xa8   :  { %v96_v46 = vpop.permute.xlu1 %95  ;;  %v94_v47 = vpop.permute.xlu0 %93 }
  0xa9   :  { %v219_v24 = vsel %vm215_vm6, %v214_v20, %v96_v46  ;;  %v218_v25 = vsel %vm215_vm6, %v213_v21, %v94_v47 }
  0xac   :  { %v104_v48 = vpop.permute.xlu1 %103  ;;  %v102_v49 = vpop.permute.xlu0 %101 }
  0xad   :  { %v222_v12 = vsel %vm220_vm7, %v217_v10, %v104_v48  ;;  %v221_v13 = vsel %vm220_vm7, %v216_v11, %v102_v49 }
  0xb0   :  { %v108_v50 = vpop.permute.xlu1 %107  ;;  %v106_v51 = vpop.permute.xlu0 %105 }
  0xb1   :  { %v224_v28 = vsel %vm220_vm7, %v219_v24, %v108_v50  ;;  %v223_v29 = vsel %vm220_vm7, %v218_v25, %v106_v51 }
  0xb4   :  { %v116_v52 = vpop.permute.xlu1 %115  ;;  %v114_v53 = vpop.permute.xlu0 %113 }
  0xb5   :  { %v227_v16 = vsel %vm225_vm8, %v222_v12, %v116_v52  ;;  %v226_v17 = vsel %vm225_vm8, %v221_v13, %v114_v53 }
  0xb8   :  { %v120_v54 = vpop.permute.xlu1 %119  ;;  %v118_v55 = vpop.permute.xlu0 %117 }
  0xb9   :  { %v229_v32 = vsel %vm225_vm8, %v224_v28, %v120_v54  ;;  %v228_v33 = vsel %vm225_vm8, %v223_v29, %v118_v55 }
  0xbc   :  { %v128_v56 = vpop.permute.xlu1 %127  ;;  %v126_v57 = vpop.permute.xlu0 %125 }
  0xbd   :  { %v232_v22 = vsel %vm230_vm9, %v227_v16, %v128_v56  ;;  %v231_v23 = vsel %vm230_vm9, %v226_v17, %v126_v57 }
  0xc0   :  { %v132_v58 = vpop.permute.xlu1 %131  ;;  %v130_v59 = vpop.permute.xlu0 %129 }
  0xc1   :  { %v234_v38 = vsel %vm230_vm9, %v229_v32, %v132_v58  ;;  %v233_v39 = vsel %vm230_vm9, %v228_v33, %v130_v59 }
  0xc4   :  { %v140_v60 = vpop.permute.xlu1 %139  ;;  %v138_v61 = vpop.permute.xlu0 %137 }
  0xc5   :  { %v237_v26 = vsel %vm235_vm10, %v232_v22, %v140_v60  ;;  %v236_v27 = vsel %vm235_vm10, %v231_v23, %v138_v61 }
  0xc8   :  { %v144_v62 = vpop.permute.xlu1 %143  ;;  %v142_v63 = vpop.permute.xlu0 %141 }
  0xc9   :  { %v239_v42 = vsel %vm235_vm10, %v234_v38, %v144_v62  ;;  %v238_v43 = vsel %vm235_vm10, %v233_v39, %v142_v63 }
  0xcc   :  { %v152_v0 = vpop.permute.xlu1 %151  ;;  %v150_v1 = vpop.permute.xlu0 %149 }
  0xcd   :  { %v242_v30 = vsel %vm240_vm11, %v237_v26, %v152_v0  ;;  %v241_v31 = vsel %vm240_vm11, %v236_v27, %v150_v1 }
  0xd0   :  { %v156_v2 = vpop.permute.xlu1 %155  ;;  %v154_v3 = vpop.permute.xlu0 %153 }
  0xd1   :  { %v244_v44 = vsel %vm240_vm11, %v239_v42, %v156_v2  ;;  %v243_v45 = vsel %vm240_vm11, %v238_v43, %v154_v3 }
  0xd4   :  { %v164_v6 = vpop.permute.xlu1 %163  ;;  %v162_v7 = vpop.permute.xlu0 %161 }
  0xd5   :  { %v247_v34 = vsel %vm245_vm12, %v242_v30, %v164_v6  ;;  %v246_v35 = vsel %vm245_vm12, %v241_v31, %v162_v7 }
  0xd8   :  { %v168_v18 = vpop.permute.xlu1 %167  ;;  %v166_v19 = vpop.permute.xlu0 %165 }
  0xd9   :  { %v249_v46 = vsel %vm245_vm12, %v244_v44, %v168_v18  ;;  %v248_v47 = vsel %vm245_vm12, %v243_v45, %v166_v19 }
  0xdc   :  { %v176_v36 = vpop.permute.xlu1 %175  ;;  %v174_v37 = vpop.permute.xlu0 %173 }
  0xdd   :  { %v252_v40 = vsel %vm250_vm13, %v247_v34, %v176_v36  ;;  %v251_v41 = vsel %vm250_vm13, %v246_v35, %v174_v37 }
  0xde   :  { %257 = vst.msk [vmem:[#allocation2 + $0x8] sm:$0xff] %vm255_vm14, %v252_v40  ;;  %256 = vst.msk [vmem:[#allocation2] sm:$0xff] %vm255_vm14, %v251_v41 }
  0xe0   :  { %v180_v48 = vpop.permute.xlu1 %179  ;;  %v178_v49 = vpop.permute.xlu0 %177 }
  0xe1   :  { %v254_v50 = vsel %vm250_vm13, %v249_v46, %v180_v48  ;;  %v253_v51 = vsel %vm250_vm13, %v248_v47, %v178_v49 }
  0xe2   :  { %259 = vst.msk [vmem:[#allocation2 + $0x18] sm:$0xff] %vm255_vm14, %v254_v50  ;;  %258 = vst.msk [vmem:[#allocation2 + $0x10] sm:$0xff] %vm255_vm14, %v253_v51 }
  0xe3   :  { %304 = shalt.err (!%p301_p4)
}
  0xe4   :  { %s305_s3 = scalar_lea.hbm %s481_s1, 512 }
  0xe5   :  { %p306_p5 = scmp.ne.s32.totalorder %s481_s1, %s305_s3  ;;  %p309_p6 = scmp.lt.u32.totalorder %s305_s3, %s481_s1 }
  0xe7   :  { %p311_p7 = pnand %p309_p6, %p306_p5 }
  0xe9   :  { %314 = shalt.err (!%p311_p7)
}
  0xea   :  { %s332_s8 = smov 128   ;;  %s333_s9 = smov 8  }
  0xeb   :  { %271 = dma.vmem_to_hbm [thread:$0]  %s266_s28, 512, %s481_s1, [#allocation3], %s332_s8, %s332_s8, %s333_s9  }
  0xec   :  { %315 = dma.done.wait [#allocation3], 512  }
  0xed   :  { %316 = vsyncadd [#allocation3], 4294966784 }
  0xee   :  { %275 = vsyncpa [#allocation3], 1 }

</bundles_post_ra>
